<compile_context>
chip_gen: v7x
topology: tpu7x:2x2x1
jax: 0.10.0
libtpu: 0.0.40
codegen_flags: <defaults>
</compile_context>

<pallas_src>
import jax
import jax.numpy as jnp
from jax.experimental import pallas as pl
from jax.experimental.pallas import tpu as pltpu

_EPS = 1e-5  # PyTorch BatchNorm2d default eps


def _stats_kernel(x_ref, sum_ref, ssq_ref):
    """Accumulate per-row sum and sum-of-squares over the L (lane) axis."""
    @pl.when(pl.program_id(0) == 0)
    def _():
        sum_ref[...] = jnp.zeros_like(sum_ref)
        ssq_ref[...] = jnp.zeros_like(ssq_ref)

    x = x_ref[...].astype(jnp.float32)
    sum_ref[...] += jnp.sum(x, axis=-1, keepdims=True)
    ssq_ref[...] += jnp.sum(x * x, axis=-1, keepdims=True)


def _affine_kernel(x_ref, a_ref, b_ref, o_ref):
    """Fused per-row (= per-channel) affine: q = A * x + B (lane-dense store)."""
    x = x_ref[...].astype(jnp.float32)
    o_ref[...] = (x * a_ref[...] + b_ref[...]).astype(o_ref.dtype)


def _pick_tile(l):
    """Largest lane-dense tile (multiple of 128, <= 2048) that divides L."""
    for t in (2048, 1024, 512, 256, 128):
        if l % t == 0:
            return t
    return l  # fallback: single full-width block (small / odd-sized inputs)


@jax.jit
def bn_chain(x_nchw, gamma1, beta1, gamma2, beta2):
    """bn1 -> bn2 -> bn1 (training-mode batch statistics) on an NCHW tensor."""
    n, c, h, w = x_nchw.shape
    l = h * w
    nc = n * c
    tile_l = _pick_tile(l)
    grid_l = l // tile_l

    # Free, contiguous view: row r of x2d holds sample r // c, channel r % c.
    x2d = x_nchw.reshape(nc, l)

    # ---- Pass 1: per-row sum / sum-of-squares (reduction over L tiles) -----
    row_sum, row_ssq = pl.pallas_call(
        _stats_kernel,
        out_shape=(
            jax.ShapeDtypeStruct((nc, 1), jnp.float32),
            jax.ShapeDtypeStruct((nc, 1), jnp.float32),
        ),
        grid=(grid_l,),
        in_specs=[pl.BlockSpec((nc, tile_l), lambda j: (0, j))],
        out_specs=(
            pl.BlockSpec((nc, 1), lambda j: (0, 0)),   # resident accumulator
            pl.BlockSpec((nc, 1), lambda j: (0, 0)),   # resident accumulator
        ),
        compiler_params=pltpu.CompilerParams(
            dimension_semantics=("arbitrary",)),
    )(x2d)

    # ---- Tiny per-channel scalar math (C values; stays in plain JAX) -------
    count = jnp.float32(n * l)
    ch_sum = jnp.sum(row_sum.reshape(n, c), axis=0)
    ch_ssq = jnp.sum(row_ssq.reshape(n, c), axis=0)
    mean = ch_sum / count
    var = jnp.maximum(ch_ssq / count - mean * mean, 0.0)   # biased variance

    g1 = gamma1.astype(jnp.float32)
    b1 = beta1.astype(jnp.float32)
    g2 = gamma2.astype(jnp.float32)

    s1 = jax.lax.rsqrt(var + _EPS)
    var_y = (g1 * g1) * var * (s1 * s1)           # stats of bn1 output
    s2 = jax.lax.rsqrt(var_y + _EPS)
    var_z = (g1 * g2) ** 2 * var * (s1 * s2) ** 2  # stats of bn2 output
    s3 = jax.lax.rsqrt(var_z + _EPS)

    a_c = g1 * s1 * g2 * s2 * g1 * s3              # combined per-channel scale
    b_c = b1 - a_c * mean                          # combined per-channel shift

    # Expand to per-row (row r -> channel r % c); tiny (nc, 1) arrays.
    a_rows = jnp.tile(a_c, (n,)).reshape(nc, 1)
    b_rows = jnp.tile(b_c, (n,)).reshape(nc, 1)

    # ---- Pass 2: fused elementwise affine, lane-dense tiles over L ---------
    out2d = pl.pallas_call(
        _affine_kernel,
        out_shape=jax.ShapeDtypeStruct((nc, l), x_nchw.dtype),
        grid=(grid_l,),
        in_specs=[
            pl.BlockSpec((nc, tile_l), lambda j: (0, j)),
            pl.BlockSpec((nc, 1), lambda j: (0, 0)),
            pl.BlockSpec((nc, 1), lambda j: (0, 0)),
        ],
        out_specs=pl.BlockSpec((nc, tile_l), lambda j: (0, j)),
        compiler_params=pltpu.CompilerParams(
            dimension_semantics=("parallel",)),       # both TCs on v7x
    )(x2d, a_rows, b_rows)

    # Free view back to NCHW.
    return out2d.reshape(n, c, h, w)


def _reference(x_nchw, gamma1, beta1, gamma2, beta2):
    """Pure-JAX 3-pass reference (training-mode BN chain)."""
    def bn(v, g, b):
        mean = jnp.mean(v, axis=(0, 2, 3), keepdims=True)
        var = jnp.mean((v - mean) ** 2, axis=(0, 2, 3), keepdims=True)
        return (v - mean) * jax.lax.rsqrt(var + _EPS) * g.reshape(1, -1, 1, 1) \
               + b.reshape(1, -1, 1, 1)

    y = bn(x_nchw, gamma1, beta1)
    z = bn(y, gamma2, beta2)
    return bn(z, gamma1, beta1)


if __name__ == "__main__":
    key = jax.random.PRNGKey(0)
    kx, k1, k2, k3, k4 = jax.random.split(key, 5)

    # Small shapes consistent with the module: 5 channels (bn1's feature count).
    N, C, H, W = 2, 5, 16, 16
    x = jax.random.normal(kx, (N, C, H, W), dtype=jnp.float32)

    # Non-trivial (possibly negative) affine params to exercise the
    # sign-correct algebraic collapse.  (PyTorch defaults are gamma=1, beta=0.)
    gamma1 = jax.random.normal(k1, (C,), dtype=jnp.float32)
    beta1 = 0.5 * jax.random.normal(k2, (C,), dtype=jnp.float32)
    gamma2 = jax.random.normal(k3, (C,), dtype=jnp.float32)
    beta2 = 0.5 * jax.random.normal(k4, (C,), dtype=jnp.float32)

    out = jax.block_until_ready(bn_chain(x, gamma1, beta1, gamma2, beta2))
    ref = _reference(x, gamma1, beta1, gamma2, beta2)

    assert out.shape == (N, C, H, W)
    assert jnp.allclose(out, ref, atol=1e-4, rtol=1e-4), \
        float(jnp.max(jnp.abs(out - ref)))

    print("KERNEL_OK")
</pallas_src>

<mosaic_0001>
module attributes {stable_mosaic.version = 11 : i64} {
  func.func @_stats_kernel(%arg0: i32, %arg1: memref<10x256xf32, #tpu.memory_space<vmem>>, %arg2: memref<10x1xf32, #tpu.memory_space<vmem>>, %arg3: memref<10x1xf32, #tpu.memory_space<vmem>>) attributes {dimension_semantics = [#tpu.dimension_semantics<arbitrary>], iteration_bounds = array<i64: 1>, scalar_prefetch = 0 : i64, scratch_operands = 0 : i64, tpu.core_type = #tpu.core_type<tc>, window_params = [{transform_indices = @transform_0, window_bounds = array<i64: 10, 256>}, {pipeline_mode = #tpu.pipeline_mode<synchronous>, transform_indices = @transform_1, window_bounds = array<i64: 10, 1>}, {pipeline_mode = #tpu.pipeline_mode<synchronous>, transform_indices = @transform_2, window_bounds = array<i64: 10, 1>}]} {
    %c0_i32 = arith.constant 0 : i32
    %0 = arith.cmpi eq, %arg0, %c0_i32 : i32
    %1 = arith.extui %0 : i1 to i32
    %c0_i32_0 = arith.constant 0 : i32
    %2 = arith.cmpi ne, %1, %c0_i32_0 : i32
    scf.if %2 {
      %cst_11 = arith.constant 0.000000e+00 : f32
      %15 = vector.broadcast %cst_11 : f32 to vector<10x1xf32>
      %c0_12 = arith.constant 0 : index
      %c0_13 = arith.constant 0 : index
      %16 = vector.load %arg2[%c0_12, %c0_13] : memref<10x1xf32, #tpu.memory_space<vmem>>, vector<10x1xf32>
      tpu.vector_store %arg2[%c0_12, %c0_13], %15 {strides = array<i32>} : memref<10x1xf32, #tpu.memory_space<vmem>>, vector<10x1xf32>,
      %cst_14 = arith.constant 0.000000e+00 : f32
      %17 = vector.broadcast %cst_14 : f32 to vector<10x1xf32>
      %c0_15 = arith.constant 0 : index
      %c0_16 = arith.constant 0 : index
      %18 = vector.load %arg3[%c0_15, %c0_16] : memref<10x1xf32, #tpu.memory_space<vmem>>, vector<10x1xf32>
      tpu.vector_store %arg3[%c0_15, %c0_16], %17 {strides = array<i32>} : memref<10x1xf32, #tpu.memory_space<vmem>>, vector<10x1xf32>,
    } else {
    }
    %c0 = arith.constant 0 : index
    %c0_1 = arith.constant 0 : index
    %3 = vector.load %arg1[%c0, %c0_1] : memref<10x256xf32, #tpu.memory_space<vmem>>, vector<10x256xf32>
    %c0_2 = arith.constant 0 : index
    %c0_3 = arith.constant 0 : index
    %4 = vector.load %arg2[%c0_2, %c0_3] : memref<10x1xf32, #tpu.memory_space<vmem>>, vector<10x1xf32>
    %cst = arith.constant dense<0.000000e+00> : vector<10xf32>
    %5 = vector.multi_reduction <add>, %3, %cst [1] : vector<10x256xf32> to vector<10xf32>
    %6 = vector.shape_cast %5 : vector<10xf32> to vector<10x1xf32>
    %7 = arith.addf %4, %6 : vector<10x1xf32>
    %c0_4 = arith.constant 0 : index
    %c0_5 = arith.constant 0 : index
    %8 = vector.load %arg2[%c0_4, %c0_5] : memref<10x1xf32, #tpu.memory_space<vmem>>, vector<10x1xf32>
    tpu.vector_store %arg2[%c0_4, %c0_5], %7 {strides = array<i32>} : memref<10x1xf32, #tpu.memory_space<vmem>>, vector<10x1xf32>,
    %c0_6 = arith.constant 0 : index
    %c0_7 = arith.constant 0 : index
    %9 = vector.load %arg3[%c0_6, %c0_7] : memref<10x1xf32, #tpu.memory_space<vmem>>, vector<10x1xf32>
    %10 = arith.mulf %3, %3 : vector<10x256xf32>
    %cst_8 = arith.constant dense<0.000000e+00> : vector<10xf32>
    %11 = vector.multi_reduction <add>, %10, %cst_8 [1] : vector<10x256xf32> to vector<10xf32>
    %12 = vector.shape_cast %11 : vector<10xf32> to vector<10x1xf32>
    %13 = arith.addf %9, %12 : vector<10x1xf32>
    %c0_9 = arith.constant 0 : index
    %c0_10 = arith.constant 0 : index
    %14 = vector.load %arg3[%c0_9, %c0_10] : memref<10x1xf32, #tpu.memory_space<vmem>>, vector<10x1xf32>
    tpu.vector_store %arg3[%c0_9, %c0_10], %13 {strides = array<i32>} : memref<10x1xf32, #tpu.memory_space<vmem>>, vector<10x1xf32>,
    return
  }
  func.func @transform_0(%arg0: i32) -> (i32, i32) {
    %c0_i32 = arith.constant 0 : i32
    %c0_i32_0 = arith.constant 0 : i32
    return %c0_i32, %arg0 : i32, i32
  }
  func.func @transform_1(%arg0: i32) -> (i32, i32) {
    %c0_i32 = arith.constant 0 : i32
    %c0_i32_0 = arith.constant 0 : i32
    %c0_i32_1 = arith.constant 0 : i32
    return %c0_i32, %c0_i32_0 : i32, i32
  }
  func.func @transform_2(%arg0: i32) -> (i32, i32) {
    %c0_i32 = arith.constant 0 : i32
    %c0_i32_0 = arith.constant 0 : i32
    %c0_i32_1 = arith.constant 0 : i32
    return %c0_i32, %c0_i32_0 : i32, i32
  }
}

module attributes {stable_mosaic.version = 11 : i64} {
  func.func @_affine_kernel(%arg0: i32, %arg1: memref<10x256xf32, #tpu.memory_space<vmem>>, %arg2: memref<10x1xf32, #tpu.memory_space<vmem>>, %arg3: memref<10x1xf32, #tpu.memory_space<vmem>>, %arg4: memref<10x256xf32, #tpu.memory_space<vmem>>) attributes {dimension_semantics = [#tpu.dimension_semantics<parallel>], iteration_bounds = array<i64: 1>, scalar_prefetch = 0 : i64, scratch_operands = 0 : i64, tpu.core_type = #tpu.core_type<tc>, window_params = [{transform_indices = @transform_0, window_bounds = array<i64: 10, 256>}, {pipeline_mode = #tpu.pipeline_mode<synchronous>, transform_indices = @transform_1, window_bounds = array<i64: 10, 1>}, {pipeline_mode = #tpu.pipeline_mode<synchronous>, transform_indices = @transform_2, window_bounds = array<i64: 10, 1>}, {transform_indices = @transform_3, window_bounds = array<i64: 10, 256>}]} {
    %c0 = arith.constant 0 : index
    %c0_0 = arith.constant 0 : index
    %0 = vector.load %arg1[%c0, %c0_0] : memref<10x256xf32, #tpu.memory_space<vmem>>, vector<10x256xf32>
    %c0_1 = arith.constant 0 : index
    %c0_2 = arith.constant 0 : index
    %1 = vector.load %arg2[%c0_1, %c0_2] : memref<10x1xf32, #tpu.memory_space<vmem>>, vector<10x1xf32>
    %2 = vector.broadcast %1 : vector<10x1xf32> to vector<10x256xf32>
    %3 = arith.mulf %0, %2 : vector<10x256xf32>
    %c0_3 = arith.constant 0 : index
    %c0_4 = arith.constant 0 : index
    %4 = vector.load %arg3[%c0_3, %c0_4] : memref<10x1xf32, #tpu.memory_space<vmem>>, vector<10x1xf32>
    %5 = vector.broadcast %4 : vector<10x1xf32> to vector<10x256xf32>
    %6 = arith.addf %3, %5 : vector<10x256xf32>
    %c0_5 = arith.constant 0 : index
    %c0_6 = arith.constant 0 : index
    %7 = vector.load %arg4[%c0_5, %c0_6] : memref<10x256xf32, #tpu.memory_space<vmem>>, vector<10x256xf32>
    tpu.vector_store %arg4[%c0_5, %c0_6], %6 {strides = array<i32>} : memref<10x256xf32, #tpu.memory_space<vmem>>, vector<10x256xf32>,
    return
  }
  func.func @transform_0(%arg0: i32) -> (i32, i32) {
    %c0_i32 = arith.constant 0 : i32
    %c0_i32_0 = arith.constant 0 : i32
    return %c0_i32, %arg0 : i32, i32
  }
  func.func @transform_1(%arg0: i32) -> (i32, i32) {
    %c0_i32 = arith.constant 0 : i32
    %c0_i32_0 = arith.constant 0 : i32
    %c0_i32_1 = arith.constant 0 : i32
    return %c0_i32, %c0_i32_0 : i32, i32
  }
  func.func @transform_2(%arg0: i32) -> (i32, i32) {
    %c0_i32 = arith.constant 0 : i32
    %c0_i32_0 = arith.constant 0 : i32
    %c0_i32_1 = arith.constant 0 : i32
    return %c0_i32, %c0_i32_0 : i32, i32
  }
  func.func @transform_3(%arg0: i32) -> (i32, i32) {
    %c0_i32 = arith.constant 0 : i32
    %c0_i32_0 = arith.constant 0 : i32
    return %c0_i32, %arg0 : i32, i32
  }
}

</mosaic_0001>

<bundles_post_ra>
// kernel: tile.18
= control target key start
LH: loop header
LB: loop body
LE: loop exit
PB: predicated region body
PF: predicated region fallthrough
CT: control target
= control target key end

     0   :  { %s22_s0 = inlined_call_operand.vmem [shape: f32[5], index: 0, kind: input, shape index: {}]   ;;  %s23_s1 = inlined_call_operand.vmem [shape: f32[2,5], index: 1, kind: output, shape index: {}]  }
   0x1   :  { %v4_v0 = vld [vmem:[%s22_s0] ss:$0 sm:$0xff] }
   0x2   :  { %5 = vst [vmem:[%s23_s1] sm:$0x3] %v4_v0 }

// kernel: tile.0
= control target key start
LH: loop header
LB: loop body
LE: loop exit
PB: predicated region body
PF: predicated region fallthrough
CT: control target
= control target key end

     0   :  { %s42_s8 = smov 127   ;;  %vm7_vm0 = vcmask 7168   ;;  %s43_s11 = smov 124   ;;  %s78_s0 = inlined_call_operand.vmem [shape: f32[2,5], index: 0, kind: input, shape index: {}]   ;;  %s79_s1 = inlined_call_operand.vmem [shape: f32[10,1], index: 1, kind: output, shape index: {}]  }
   0x1   :  { %v4_v0 = vld [vmem:[%s78_s0] sm:$0x3]  ;;  %s41_s0 = smov 125   ;;  %s44_s12 = smov 126  }
   0x2   :  { %5 = vst [vmem:[#allocation0] sm:$0x3] %v4_v0 }
   0x9   :  { %v21_v1 = vld [vmem:[#allocation0] sm:$0x3]  }
   0xa   :  { %v9_v2 = vld [vmem:[#allocation0] sm:$0x3]   ;;  %22 = vrot.lane.b32.xlu1 %v21_v1, %s41_s0 }
   0xb   :  { %10 = vrot.lane.b32.xlu0 %v9_v2, %s42_s8  ;;  %v6_v3 = vld [vmem:[#allocation0] sm:$0x3]  }
   0xc   :  { %v27_v4 = vld [vmem:[#allocation0] sm:$0x3]   ;;  %8 = vst.msk [vmem:[%s79_s1] ss:$5 sm:$0x3] %vm7_vm0, %v6_v3  }
   0xd   :  { %v15_v5 = vld [vmem:[#allocation0] sm:$0x3]  }
   0xe   :  { %28 = vrot.lane.b32.xlu1 %v27_v4, %s43_s11 }
   0xf   :  { %16 = vrot.lane.b32.xlu0 %v15_v5, %s44_s12 }
  0x7c   :  { %v23_v6 = vpop.permute.xlu1 %22  }
  0x7d   :  { %v11_v7 = vpop.permute.xlu0 %10   ;;  %35 = vst.msk [vmem:[%s79_s1 + $0x3] ss:$5 sm:$0x3] %vm7_vm0, %v23_v6  }
  0x7e   :  { %33 = vst.msk [vmem:[%s79_s1 + $0x1] ss:$5 sm:$0x3] %vm7_vm0, %v11_v7  }
  0x80   :  { %v29_v8 = vpop.permute.xlu1 %28  }
  0x81   :  { %v17_v9 = vpop.permute.xlu0 %16   ;;  %36 = vst.msk [vmem:[%s79_s1 + $0x4] ss:$5 sm:$0x3] %vm7_vm0, %v29_v8  }
  0x82   :  { %34 = vst.msk [vmem:[%s79_s1 + $0x2] ss:$5 sm:$0x3] %vm7_vm0, %v17_v9  }

// kernel: bn_chain.3
= control target key start
LH: loop header
LB: loop body
LE: loop exit
PB: predicated region body
PF: predicated region fallthrough
CT: control target
= control target key end

     0   :  { %v61_v0 = vmov 0   ;;  %s118_s2 = inlined_call_operand.vmem [shape: f32[10,1], index: 2, kind: input, shape index: {}]   ;;  %s119_s1 = inlined_call_operand.vmem [shape: f32[10,1], index: 1, kind: input, shape index: {}]   ;;  %s120_s0 = inlined_call_operand.vmem [shape: f32[10,256], index: 0, kind: input, shape index: {}]   ;;  %s121_s3 = inlined_call_operand.vmem [shape: f32[10,256], index: 3, kind: output, shape index: {}]  }
   0x1   :  { %60 = vset.pattern.permute.xlu1 %v61_v0  ;;  %59 = vset.pattern.permute.xlu0 %v61_v0  ;;  %v34_v1 = vld [vmem:[%s118_s2] sm:$0xff]  ;;  %v35_v3 = vld [vmem:[%s118_s2 + $0x8] sm:$0x3]  ;;  %v16_v11 = vld [vmem:[%s120_s0 + $0x10] sm:$0x3] }
   0x2   :  { %v18_v2 = vld [vmem:[%s119_s1] sm:$0xff]  ;;  %38 = vperm.xlu1 %60, %v34_v1   ;;  %v19_v4 = vld [vmem:[%s119_s1 + $0x8] sm:$0x3]  ;;  %v17_v12 = vld [vmem:[%s120_s0 + $0x18] sm:$0x3] }
   0x3   :  { %22 = vperm.xlu0 %59, %v18_v2   ;;  %v14_v5 = vld [vmem:[%s120_s0] sm:$0xff]  ;;  %v15_v6 = vld [vmem:[%s120_s0 + $0x8] sm:$0xff] }
   0x6   :  { %43 = vperm.xlu1 %60, %v35_v3  }
   0x7   :  { %27 = vperm.xlu0 %59, %v19_v4  }
  0x81   :  { %v39_v7 = vpop.permute.xlu1 %38 }
  0x82   :  { %v23_v8 = vpop.permute.xlu0 %22 }
  0x83   :  { %v30_v9 = vmul.f32 %v23_v8, %v14_v5  ;;  %v31_v10 = vmul.f32 %v23_v8, %v15_v6 }
  0x85   :  { %v46_v13 = vadd.f32 %v39_v7, %v30_v9  ;;  %v47_v14 = vadd.f32 %v39_v7, %v31_v10  ;;  %v44_v18 = vpop.permute.xlu1 %43 }
  0x86   :  { %v28_v15 = vpop.permute.xlu0 %27 }
  0x87   :  { %50 = vst [vmem:[%s121_s3] sm:$0xff] %v46_v13  ;;  %51 = vst [vmem:[%s121_s3 + $0x8] sm:$0xff] %v47_v14  ;;  %v32_v16 = vmul.f32 %v28_v15, %v16_v11  ;;  %v33_v17 = vmul.f32 %v28_v15, %v17_v12 }
  0x89   :  { %v48_v19 = vadd.f32 %v44_v18, %v32_v16  ;;  %v49_v20 = vadd.f32 %v44_v18, %v33_v17 }
  0x8b   :  { %52 = vst [vmem:[%s121_s3 + $0x10] sm:$0x3] %v48_v19  ;;  %53 = vst [vmem:[%s121_s3 + $0x18] sm:$0x3] %v49_v20 }

// kernel: bn_chain.2
= control target key start
LH: loop header
LB: loop body
LE: loop exit
PB: predicated region body
PF: predicated region fallthrough
CT: control target
= control target key end

     0   :  { %vm29_vm0 = vcmask 1041408   ;;  %vm14_vm1 = vcmask 7168   ;;  %v68_v3 = vmov 0.0   ;;  %vm16_vm2 = vcmask 1024   ;;  %s144_s0 = inlined_call_operand.vmem [shape: f32[10,256], index: 0, kind: input, shape index: {}]   ;;  %s145_s2 = inlined_call_operand.vmem [shape: f32[10,1], index: 2, kind: output, shape index: {1}]   ;;  %s146_s1 = inlined_call_operand.vmem [shape: f32[10,1], index: 1, kind: output, shape index: {0}]  }
   0x1   :  { %v20_v0 = vld [vmem:[%s144_s0] sm:$0xff]  ;;  %v21_v1 = vld [vmem:[%s144_s0 + $0x8] sm:$0xff]  ;;  %v22_v2 = vld [vmem:[%s144_s0 + $0x10] sm:$0x3]  ;;  %18 = vst.msk [vmem:[%s145_s2] sm:$0xff] %vm14_vm1, %v68_v3 }
   0x2   :  { %v43_v4 = vmul.f32 %v20_v0, %v20_v0  ;;  %v44_v5 = vmul.f32 %v21_v1, %v21_v1  ;;  %v26_v6 = vadd.f32 %v21_v1, %v20_v0  ;;  %v23_v7 = vld [vmem:[%s144_s0 + $0x18] sm:$0x3]  ;;  %v45_v8 = vmul.f32 %v22_v2, %v22_v2  ;;  %15 = vst.msk [vmem:[%s146_s1] sm:$0xff] %vm14_vm1, %v68_v3 }
   0x3   :  { %v46_v9 = vmul.f32 %v23_v7, %v23_v7  ;;  %v30_v10 = vsel %vm29_vm0, %v22_v2, 0.0  ;;  %v31_v11 = vsel %vm29_vm0, %v23_v7, 0.0  ;;  %19 = vst.msk [vmem:[%s145_s2 + $0x8] sm:$0x3] %vm16_vm2, %v68_v3  ;;  %17 = vst.msk [vmem:[%s146_s1 + $0x8] sm:$0x3] %vm16_vm2, %v68_v3 }
   0x4   :  { %v47_v12 = vadd.f32 %v44_v5, %v43_v4  ;;  %27 = vadd.xlane.f32.xlu0 %v26_v6  ;;  %v50_v13 = vsel %vm29_vm0, %v45_v8, 0.0  ;;  %v32_v14 = vadd.f32 %v31_v11, %v30_v10 }
   0x5   :  { %v51_v15 = vsel %vm29_vm0, %v46_v9, 0.0 }
   0x6   :  { %48 = vadd.xlane.f32.xlu1 %v47_v12  ;;  %v52_v16 = vadd.f32 %v51_v15, %v50_v13 }
   0x8   :  { %33 = vadd.xlane.f32.xlu0 %v32_v14  ;;  %v41_v18 = vld [vmem:[%s145_s2] sm:$0xff] }
   0x9   :  { %v24_v17 = vld [vmem:[%s146_s1] sm:$0xff] }
   0xa   :  { %53 = vadd.xlane.f32.xlu1 %v52_v16  ;;  %v25_v22 = vld [vmem:[%s146_s1 + $0x8] sm:$0x3] }
   0xb   :  { %v42_v24 = vld [vmem:[%s145_s2 + $0x8] sm:$0x3] }
  0x91   :  { %v28_v19 = vpop.xlane.xlu0 %27 }
  0x92   :  { %v35_v20 = vadd.f32 %v28_v19, %v24_v17 }
  0x93   :  { %v49_v21 = vpop.xlane.xlu1 %48 }
  0x94   :  { %v55_v23 = vadd.f32 %v49_v21, %v41_v18  ;;  %38 = vst.msk [vmem:[%s146_s1] sm:$0xff] %vm14_vm1, %v35_v20 }
  0x95   :  { %v34_v25 = vpop.xlane.xlu0 %33 }
  0x96   :  { %57 = vst.msk [vmem:[%s145_s2] sm:$0xff] %vm14_vm1, %v55_v23  ;;  %v36_v26 = vadd.f32 %v34_v25, %v25_v22 }
  0x97   :  { %v54_v27 = vpop.xlane.xlu1 %53 }
  0x98   :  { %v56_v28 = vadd.f32 %v54_v27, %v42_v24  ;;  %40 = vst.msk [vmem:[%s146_s1 + $0x8] sm:$0x3] %vm16_vm2, %v36_v26 }
  0x9a   :  { %58 = vst.msk [vmem:[%s145_s2 + $0x8] sm:$0x3] %vm16_vm2, %v56_v28 }

</bundles_post_ra>
